<compile_context>
chip_gen: v6e
topology: v6e:2x2x1
jax: 0.10.0
libtpu: 0.0.40
codegen_flags: <defaults>
</compile_context>

<pallas_src>
import functools
import math

import jax
import jax.numpy as jnp
from jax import lax
from jax.experimental import pallas as pl
from jax.experimental.pallas import tpu as pltpu


def _arcface_kernel(labels_ref, e_inv_ref, emb_ref, w_ref, out_ref, *,
                    cos_m, sin_m, scale, tc):
    """Computes one (tb, tc) slab of scaled ArcFace logits.

    emb_ref / w_ref are raw (storage-dtype) tiles; normalization is applied
    post-matmul as a row scale (e_inv, precomputed in the wrapper) and a
    column scale (rsqrt of this weight tile's per-class sum of squares), so
    the MXU operands stay in their storage dtype and no normalized weight
    copy is materialized.
    """
    w = w_ref[...]                                   # (tc, E) storage dtype
    w32 = w.astype(jnp.float32)
    # 1 / max(||w_c||, eps) == rsqrt(max(sum(w_c^2), eps^2))  (rsqrt -> EUP)
    w_inv = lax.rsqrt(jnp.maximum(jnp.sum(w32 * w32, axis=-1), 1e-24))  # (tc,)

    # Raw dot product: contract E of both operands directly on the MXU
    # (no materialized transpose), accumulate in f32.
    dots = lax.dot_general(
        emb_ref[...], w,
        dimension_numbers=(((1,), (1,)), ((), ())),
        preferred_element_type=jnp.float32)          # (tb, tc)

    # cosine = dots / (||e|| * ||w||): fused row-scale x column-scale.
    cosine = dots * e_inv_ref[...] * w_inv[None, :]

    # theta = acos(clamp(cosine)); target = cos(theta + margin) via the exact
    # identity cos(acos(c)+m) = c*cos(m) - sqrt(1-c^2)*sin(m)  (sqrt -> EUP).
    clamped = jnp.clip(cosine, -1.0 + 1e-7, 1.0 - 1e-7)
    sin_theta = jnp.sqrt(1.0 - clamped * clamped)
    target_logit = clamped * cos_m - sin_theta * sin_m

    # one-hot over the class dim: shift labels by this tile's class offset
    # ((tb,1) subtract) instead of adding the offset to the (tb,tc) iota.
    local_labels = labels_ref[...] - pl.program_id(1) * tc      # (tb, 1)
    col_ids = lax.broadcasted_iota(jnp.int32, cosine.shape, 1)  # (tb, tc)
    one_hot = col_ids == local_labels

    out_ref[...] = (jnp.where(one_hot, target_logit, cosine) * scale
                    ).astype(out_ref.dtype)


def _divisor_tiles(total, align):
    """Divisors of `total` that are multiples of `align` (plus `total`), desc."""
    cands = {total}
    d = align
    while d <= total:
        if total % d == 0:
            cands.add(d)
        d += align
    return sorted(cands, reverse=True)


def arcface_loss_forward(embeddings, weight, labels, *, margin=0.5, scale=30.0,
                         max_tc=512, max_tb=256, out_dtype=None):
    """embeddings: (B, E), weight: (C, E), labels: (B,) int -> (B, C) logits."""
    B, E = embeddings.shape
    C, E2 = weight.shape
    assert E == E2
    out_dtype = embeddings.dtype if out_dtype is None else out_dtype

    # Pad E to a lane-aligned width once in HBM (zero columns don't change the
    # norms or the dot); skipped when already 128-aligned.
    Ep = ((E + 127) // 128) * 128 if E % 128 else E
    if Ep != E:
        embeddings = jnp.pad(embeddings, ((0, 0), (0, Ep - E)))
        weight = jnp.pad(weight, ((0, 0), (0, Ep - E)))

    # Row scale 1/max(||e||, eps), computed once in the wrapper ((B,1) f32);
    # embeddings themselves stay in their storage dtype for the MXU.
    e32 = embeddings.astype(jnp.float32)
    e_inv = lax.rsqrt(jnp.maximum(jnp.sum(e32 * e32, axis=-1, keepdims=True),
                                  1e-24))
    labels2d = labels.astype(jnp.int32).reshape(B, 1)

    e_item = embeddings.dtype.itemsize
    w_item = weight.dtype.itemsize
    o_item = jnp.dtype(out_dtype).itemsize

    # Per-generation VMEM budget (v5e/v6e: 128 MiB, v7x: 64 MiB physical).
    try:
        vmem_cap = int(pltpu.get_tpu_info().vmem_capacity_bytes)
    except Exception:  # pragma: no cover - conservative fallback
        vmem_cap = 64 * 1024 * 1024
    budget = int(vmem_cap * 0.6)

    # Batch tile: whole batch when small, otherwise a sublane-aligned divisor.
    if B <= max_tb:
        tb = B
    else:
        tb = next((t for t in _divisor_tiles(B, 8) if t <= max_tb), B)

    def footprint(tb_, tc_):
        blocks = (tb_ * Ep * e_item + tc_ * Ep * w_item
                  + tb_ * tc_ * o_item + tb_ * 8)
        temps = 8 * tb_ * tc_ * 4 + tc_ * Ep * 4
        return 2 * blocks + temps          # double-buffered blocks + temporaries

    # Class tile: largest lane-aligned divisor of C (or C itself) under budget.
    tc_cands = _divisor_tiles(C, 128)
    tc = None
    for cand in tc_cands:
        if cand <= max_tc and footprint(tb, cand) <= budget:
            tc = cand
            break
    if tc is None:
        tc = tc_cands[-1]
    # v7x megacore: give the parallel grid >=2 steps when it is cheap to do so.
    if (B // tb) * (C // tc) < 2 and tc % 256 == 0:
        tc //= 2

    n_b, n_c = B // tb, C // tc
    vmem_limit = int(min(vmem_cap, max(footprint(tb, tc) + (8 << 20), 32 << 20)))

    kernel = functools.partial(
        _arcface_kernel,
        cos_m=float(math.cos(margin)),
        sin_m=float(math.sin(margin)),
        scale=float(scale),
        tc=tc)

    cost = pl.CostEstimate(
        flops=int(2 * B * C * Ep + 10 * B * C),
        transcendentals=int(2 * B * C),
        bytes_accessed=int(n_b * C * Ep * w_item + B * Ep * e_item
                           + B * C * o_item + B * 8))

    return pl.pallas_call(
        kernel,
        out_shape=jax.ShapeDtypeStruct((B, C), out_dtype),
        grid_spec=pltpu.PrefetchScalarGridSpec(
            num_scalar_prefetch=0,
            grid=(n_b, n_c),
            in_specs=[
                pl.BlockSpec((tb, 1), lambda i, j: (i, 0)),    # labels
                pl.BlockSpec((tb, 1), lambda i, j: (i, 0)),    # 1/||e|| row scale
                pl.BlockSpec((tb, Ep), lambda i, j: (i, 0)),   # raw embeddings
                pl.BlockSpec((tc, Ep), lambda i, j: (j, 0)),   # raw weight tile
            ],
            out_specs=pl.BlockSpec((tb, tc), lambda i, j: (i, j)),
        ),
        compiler_params=pltpu.CompilerParams(
            dimension_semantics=("parallel", "parallel"),
            vmem_limit_bytes=vmem_limit),
        cost_estimate=cost,
    )(labels2d, e_inv, embeddings, weight)


def _reference(embeddings, weight, labels, margin=0.5, scale=30.0):
    """Pure-JAX reference mirroring the PyTorch forward."""
    e_n = embeddings / jnp.maximum(
        jnp.linalg.norm(embeddings, axis=-1, keepdims=True), 1e-12)
    w_n = weight / jnp.maximum(
        jnp.linalg.norm(weight, axis=-1, keepdims=True), 1e-12)
    cosine = e_n @ w_n.T
    theta = jnp.arccos(jnp.clip(cosine, -1.0 + 1e-7, 1.0 - 1e-7))
    target_logit = jnp.cos(theta + margin)
    one_hot = jax.nn.one_hot(labels, weight.shape[0], dtype=cosine.dtype)
    return (one_hot * target_logit + (1.0 - one_hot) * cosine) * scale


if __name__ == "__main__":
    B, E, C = 8, 32, 256          # batch, embedding_size, num_classes
    margin, scale = 0.5, 30.0

    key = jax.random.PRNGKey(0)
    k_emb, k_w, k_lab = jax.random.split(key, 3)

    embeddings = jax.random.normal(k_emb, (B, E), dtype=jnp.float32)
    # xavier_uniform_ for weight of shape (num_classes, embedding_size)
    bound = (6.0 / (C + E)) ** 0.5
    weight = jax.random.uniform(k_w, (C, E), dtype=jnp.float32,
                                minval=-bound, maxval=bound)
    labels = jax.random.randint(k_lab, (B,), 0, C, dtype=jnp.int32)

    out = arcface_loss_forward(embeddings, weight, labels,
                               margin=margin, scale=scale)
    out = jax.block_until_ready(out)

    ref = _reference(embeddings, weight, labels, margin=margin, scale=scale)
    assert out.shape == (B, C)
    assert jnp.allclose(out, ref, atol=1e-4, rtol=1e-4), "mismatch vs reference"

    print("KERNEL_OK")
</pallas_src>

<mosaic_0001>
module attributes {stable_mosaic.version = 11 : i64} {
  func.func @_arcface_kernel(%arg0: i32, %arg1: i32, %arg2: memref<8x1xi32, #tpu.memory_space<vmem>>, %arg3: memref<8x1xf32, #tpu.memory_space<vmem>>, %arg4: memref<8x128xf32, #tpu.memory_space<vmem>>, %arg5: memref<128x128xf32, #tpu.memory_space<vmem>>, %arg6: memref<8x128xf32, #tpu.memory_space<vmem>>) attributes {dimension_semantics = [#tpu.dimension_semantics<parallel>, #tpu.dimension_semantics<parallel>], iteration_bounds = array<i64: 1, 2>, scalar_prefetch = 0 : i64, scratch_operands = 0 : i64, tpu.core_type = #tpu.core_type<tc>, window_params = [{transform_indices = @transform_0, window_bounds = array<i64: 8, 1>}, {transform_indices = @transform_1, window_bounds = array<i64: 8, 1>}, {transform_indices = @transform_2, window_bounds = array<i64: 8, 128>}, {transform_indices = @transform_3, window_bounds = array<i64: 128, 128>}, {transform_indices = @transform_4, window_bounds = array<i64: 8, 128>}]} {
    %c0 = arith.constant 0 : index
    %c0_0 = arith.constant 0 : index
    %0 = vector.load %arg5[%c0, %c0_0] : memref<128x128xf32, #tpu.memory_space<vmem>>, vector<128x128xf32>
    %1 = arith.mulf %0, %0 : vector<128x128xf32>
    %cst = arith.constant dense<0.000000e+00> : vector<128xf32>
    %2 = vector.multi_reduction <add>, %1, %cst [1] : vector<128x128xf32> to vector<128xf32>
    %cst_1 = arith.constant 1.000000e-24 : f32
    %3 = vector.broadcast %cst_1 : f32 to vector<128xf32>
    %4 = arith.maximumf %2, %3 : vector<128xf32>
    %5 = math.rsqrt %4 : vector<128xf32>
    %c0_2 = arith.constant 0 : index
    %c0_3 = arith.constant 0 : index
    %6 = vector.load %arg4[%c0_2, %c0_3] : memref<8x128xf32, #tpu.memory_space<vmem>>, vector<8x128xf32>
    %cst_4 = arith.constant dense<0.000000e+00> : vector<8x128xf32>
    %7 = tpu.matmul %6, %0, %cst_4 {dimension_numbers = #tpu.dot_dimension_numbers<[1], [1], [0], [0], [0, 0, 1, 0], [], []>} : vector<8x128xf32>, vector<128x128xf32>, vector<8x128xf32> -> vector<8x128xf32>
    %c0_5 = arith.constant 0 : index
    %c0_6 = arith.constant 0 : index
    %8 = vector.load %arg3[%c0_5, %c0_6] : memref<8x1xf32, #tpu.memory_space<vmem>>, vector<8x1xf32>
    %9 = vector.broadcast %8 : vector<8x1xf32> to vector<8x128xf32>
    %10 = arith.mulf %7, %9 : vector<8x128xf32>
    %11 = vector.shape_cast %5 : vector<128xf32> to vector<1x128xf32>
    %12 = vector.broadcast %11 : vector<1x128xf32> to vector<8x128xf32>
    %13 = arith.mulf %10, %12 : vector<8x128xf32>
    %cst_7 = arith.constant -0.99999988 : f32
    %cst_8 = arith.constant 0.99999988 : f32
    %14 = vector.broadcast %cst_7 : f32 to vector<8x128xf32>
    %15 = arith.maximumf %14, %13 : vector<8x128xf32>
    %16 = vector.broadcast %cst_8 : f32 to vector<8x128xf32>
    %17 = arith.minimumf %16, %15 : vector<8x128xf32>
    %18 = arith.mulf %17, %17 : vector<8x128xf32>
    %cst_9 = arith.constant 1.000000e+00 : f32
    %19 = vector.broadcast %cst_9 : f32 to vector<8x128xf32>
    %20 = arith.subf %19, %18 : vector<8x128xf32>
    %21 = math.sqrt %20 : vector<8x128xf32>
    %cst_10 = arith.constant 0.87758255 : f32
    %22 = vector.broadcast %cst_10 : f32 to vector<8x128xf32>
    %23 = arith.mulf %17, %22 : vector<8x128xf32>
    %cst_11 = arith.constant 0.47942555 : f32
    %24 = vector.broadcast %cst_11 : f32 to vector<8x128xf32>
    %25 = arith.mulf %21, %24 : vector<8x128xf32>
    %26 = arith.subf %23, %25 : vector<8x128xf32>
    %c0_12 = arith.constant 0 : index
    %c0_13 = arith.constant 0 : index
    %27 = vector.load %arg2[%c0_12, %c0_13] : memref<8x1xi32, #tpu.memory_space<vmem>>, vector<8x1xi32>
    %c128_i32 = arith.constant 128 : i32
    %28 = arith.muli %arg1, %c128_i32 : i32
    %29 = vector.broadcast %28 : i32 to vector<8x1xi32>
    %30 = arith.subi %27, %29 : vector<8x1xi32>
    %31 = tpu.iota {dimensions = array<i32: 1>} : vector<8x128xi32>
    %32 = vector.broadcast %30 : vector<8x1xi32> to vector<8x128xi32>
    %33 = arith.cmpi eq, %31, %32 : vector<8x128xi32>
    %34 = arith.select %33, %26, %13 : vector<8x128xi1>, vector<8x128xf32>
    %cst_14 = arith.constant 3.000000e+01 : f32
    %35 = vector.broadcast %cst_14 : f32 to vector<8x128xf32>
    %36 = arith.mulf %34, %35 : vector<8x128xf32>
    %c0_15 = arith.constant 0 : index
    %c0_16 = arith.constant 0 : index
    %37 = vector.load %arg6[%c0_15, %c0_16] : memref<8x128xf32, #tpu.memory_space<vmem>>, vector<8x128xf32>
    tpu.vector_store %arg6[%c0_15, %c0_16], %36 {strides = array<i32>} : memref<8x128xf32, #tpu.memory_space<vmem>>, vector<8x128xf32>,
    return
  }
  func.func @transform_0(%arg0: i32, %arg1: i32) -> (i32, i32) {
    %c0_i32 = arith.constant 0 : i32
    %c0_i32_0 = arith.constant 0 : i32
    return %arg0, %c0_i32 : i32, i32
  }
  func.func @transform_1(%arg0: i32, %arg1: i32) -> (i32, i32) {
    %c0_i32 = arith.constant 0 : i32
    %c0_i32_0 = arith.constant 0 : i32
    return %arg0, %c0_i32 : i32, i32
  }
  func.func @transform_2(%arg0: i32, %arg1: i32) -> (i32, i32) {
    %c0_i32 = arith.constant 0 : i32
    %c0_i32_0 = arith.constant 0 : i32
    return %arg0, %c0_i32 : i32, i32
  }
  func.func @transform_3(%arg0: i32, %arg1: i32) -> (i32, i32) {
    %c0_i32 = arith.constant 0 : i32
    %c0_i32_0 = arith.constant 0 : i32
    return %arg1, %c0_i32 : i32, i32
  }
  func.func @transform_4(%arg0: i32, %arg1: i32) -> (i32, i32) {
    %c0_i32 = arith.constant 0 : i32
    return %arg0, %arg1 : i32, i32
  }
}

</mosaic_0001>

<bundles_post_ra>
// kernel: tpu_custom_call.1
= control target key start
LH: loop header
LB: loop body
LE: loop exit
PB: predicated region body
PF: predicated region fallthrough
CT: control target
= control target key end

     0   :  { %9 = vsyncpa [#allocation3], 0  ;;  %s1318_s0 = inlined_call_operand.vmem [shape: s32[8,1], index: 0, kind: input, shape index: {}]   ;;  %s1319_s1 = inlined_call_operand.vmem [shape: f32[8,1], index: 1, kind: input, shape index: {}]   ;;  %s1320_s2 = inlined_call_operand.vmem [shape: f32[8,128], index: 2, kind: input, shape index: {}]   ;;  %s1321_s3 = inlined_call_operand.hbm [shape: f32[256,128], index: 3, kind: input, shape index: {}]   ;;  %s1322_s4 = inlined_call_operand.hbm [shape: f32[8,256], index: 4, kind: output, shape index: {}]  }
   0x1   :  { %11 = vsyncpa [#allocation3 + $0x1], 0 }
   0x2   :  { %12 = vsyncpa [#allocation4], 0 }
   0x3   :  { %14 = vsyncpa [#allocation4 + $0x1], 0  ;;  %s1080_s15 = smov 0   ;;  %s1082_s16 = smov 0  }
   0x4   :  { %s1084_s17 = smov 0   ;;  %s1086_s18 = smov 0  }
   0x5   :  { %s1088_s19 = smov 0   ;;  %s1090_s20 = smov 0  }
   0x6 LB: > { %s763_s21 = sadd.s32 4294967295, %s1046_s20   ;;  %s764_s22 = sadd.s32 4294967294, %s1046_s20   ;;  %s1046_s20 = sphi %s1090_s20, %s20_s20   ;;  %s1042_s19 = sphi %s1088_s19, %s1333_s19   ;;  %s1038_s18 = sphi %s1086_s18, %s1332_s18   ;;  %s1034_s17 = sphi %s1084_s17, %s1331_s17   ;;  %s1030_s16 = sphi %s1082_s16, %s1330_s16   ;;  %s1026_s15 = sphi %s1080_s15, %s1329_s15  }
   0x7   : > { %s29_s23 = sadd.s32 1, %s1042_s19  ;;  %s117_s24 = sadd.s32 1, %s1034_s17 }
   0x8   : > { %p30_p0 = scmp.ge.s32.totalorder %s29_s23, 2  ;;  %p124_p1 = scmp.ne.s32.totalorder %s1034_s17, %s1030_s16 }
   0x9   : > { %p125_p2 = scmp.eq.s32.totalorder %s1046_s20, 0  ;;  %p130_p3 = scmp.ne.s32.totalorder %s1030_s16, %s1026_s15 }
   0xa   : > { %s1335_s23 = smov (%p30_p0, %s29_s23), 0  ;;  %p131_p5 = scmp.eq.s32.totalorder %s763_s21, 0 }
   0xb   : > { %p1121_p4 = por %p125_p2, %p124_p1  ;;  %s114_s26 = ssub.s32 %s1042_s19, %s1335_s23 }
   0xc   : > { %p156_p6 = scmp.eq.s32.totalorder %s763_s21, 1  ;;  %p115_p7 = scmp.eq.s32.totalorder %s114_s26, 0 }
   0xd   : > { %p1127_p8 = por %p131_p5, %p130_p3  ;;  %p162_p10 = scmp.eq.s32.totalorder %s764_s22, 1 }
   0xe   : > { %p1131_p9 = por %p156_p6, %p124_p1  ;;  %p847_p13 = scmp.lt.s32.totalorder %s1046_s20, 2 }
   0xf   : > { %s1136_s29 = scalar_select %p115_p7, %s1034_s17, %s117_s24  }
  0x10   : > { %p1138_p11 = por %p162_p10, %p130_p3  ;;  %s203_s5 = sand.u32 1, %s1034_s17  }
  0x11   : > { %s770_s6 = sshll.u32 %s203_s5, 7  ;;  %s782_s7 = sshll.u32 %s1042_s19, 11 }
  0x12   : > { %s213_s10 = scalar_lea.hbm %s1321_s3, %s782_s7  ;;  %s207_s11 = scalar_lea.vmem [#allocation2], %s770_s6 }
  0x13   : > { %s214_s12 = sshll.u32 %s207_s11, 4  ;;  %p1151_p0 = pnand %p847_p13, %p1121_p4  ;;  %s215_s12 = int_to_ptr.vmem [resolvable:$true] %s214_s12 }
  0x14   : > { %p773_p1 = scmp.ge.s32.totalorder %s1046_s20, 1  ;;  %s204_s14 = scalar_lea.sflag [#allocation3], %s203_s5 }
  0x15   : > { %p940_p2 = pneg %p1151_p0  ;;  %s951_s21 = scalar_lea.vmem %s215_s12, 2048 }
  0x16   : > { %p952_p3 = scmp.ne.s32.totalorder %s215_s12, %s951_s21  ;;  %s1048_s22 = smov [#allocation2]  }
  0x17   : > { %s956_s24 = sshll.u32 %s1048_s22, 4  ;;  %s957_s24 = int_to_ptr.vmem [resolvable:$false] %s956_s24 }
  0x18   : > { %p954_p5 = pnand %p952_p3, %p940_p2  ;;  %s958_s26 = scalar_lea.vmem %s957_s24, 4096 }
  0x19   : > { %p959_p7 = scmp.lt.s32.totalorder %s215_s12, %s957_s24  ;;  %p960_p10 = scmp.lt.s32.totalorder %s958_s26, %s951_s21 }
  0x1a   : > { %p955_p6 = pneg %p954_p5 }
  0x1b   : > { %p961_p12 = por %p960_p10, %p959_p7 }
  0x1d   : > { %p962_p4 = pnand %p961_p12, %p955_p6 }
  0x1f   : > { %965 = shalt.err (!%p962_p4)
}
  0x20   : > { %s1049_s25 = smov 128   ;;  %s1050_s5 = smov 8  }
  0x21   : > { %842 = dma.hbm_to_vmem [thread:$0]  (!%p1151_p0), %s213_s10, 2048, %s215_s12, %s204_s14, %s1049_s25, %s1049_s25, %s1050_s5  }
  0x22   : > { %p222_p13 = scmp.lt.s32.totalorder %s1046_s20, 3 }
  0x24   : > { %p223_p2 = pnand %p773_p1, %p222_p13 }
  0x25   : > { %s1164_s6 = sand.u32 (!%p223_p2), 1, %s1030_s16  }
  0x26   : > { %226 = sbr.rel (%p223_p2) target bundleno = 351 (0x15f), region = 36  ;;  %s774_s7 = sshll.u32 (!%p223_p2), %s1164_s6, 7 }
  0x27   : > { %s229_s8 = scalar_lea.sflag (!%p223_p2), [#allocation3], %s1164_s6  ;;  %s1168_s9 = scalar_lea.vmem (!%p223_p2), [#allocation2], %s774_s7 }
  0x2b   : > { %1017 = dma.done.wait (%p1127_p8), %s229_s8, 2048  }
  0x2c   : > { %1019 = vsyncadd (%p1127_p8), %s229_s8, 4294965248  ;;  %v1051_v0 = vmov 0.0   ;;  %vm1052_vm0 = vmmov 0   ;;  %v1053_v1 = vmov 0   ;;  %v297_v2 = vld [vmem:[%s1168_s9 + $0x78] sm:$0xff]  ;;  %v296_v3 = vld [vmem:[%s1168_s9 + $0x70] sm:$0xff]  ;;  %v472_v46 = vlaneseq }
  0x2d   : > { %800 = vmatprep.subr.mxu0 %v1051_v0  ;;  %832 = vmatprep.mubr.msk.f32.mxu0 %vm1052_vm0, %v1051_v0  ;;  %v1180_v4 = vld [vmem:[%s1168_s9 + $0x10] sm:$0xff]  ;;  %v1183_v5 = vld [vmem:[%s1168_s9] sm:$0xff]  ;;  %v295_v7 = vld [vmem:[%s1168_s9 + $0x68] sm:$0xff]  ;;  %v313_v32 = vmul.f32 %v297_v2, %v297_v2  ;;  %v312_v33 = vmul.f32 %v296_v3, %v296_v3  ;;  %s777_s27 = sshll.u32 %s1038_s18, 7  ;;  %vm483_vm1 = vcmask 130112   ;;  %vm490_vm2 = vcmask 195712  }
  0x2e   : > { %902 = vset.pattern.permute.xlu0 %v1053_v1  ;;  %903 = vset.pattern.permute.xlu1 %v1053_v1  ;;  %v300_v6 = vmul.f32 %v1180_v4, %v1180_v4  ;;  %v1190_v8 = vld [vmem:[%s1168_s9 + $0x18] sm:$0xff]  ;;  %v298_v9 = vmul.f32 %v1183_v5, %v1183_v5  ;;  %v1195_v10 = vld [vmem:[%s1168_s9 + $0x8] sm:$0xff]  ;;  %v294_v13 = vld [vmem:[%s1168_s9 + $0x60] sm:$0xff]  ;;  %v311_v30 = vmul.f32 %v295_v7, %v295_v7  ;;  %v613_v35 = vstv %s777_s27  ;;  %s775_s22 = sshll.u32 %s1164_s6, 3  ;;  %s636_s7 = scalar_lea.hbm %s1322_s4, %s777_s27 }
  0x2f   : > { %801 = vmatpush3.xpose.msra.mxu0 %v297_v2  ;;  %v301_v11 = vmul.f32 %v1190_v8, %v1190_v8  ;;  %v299_v12 = vmul.f32 %v1195_v10, %v1195_v10  ;;  %v287_v14 = vld [vmem:[%s1168_s9 + $0x28] sm:$0xff]  ;;  %v286_v15 = vld [vmem:[%s1168_s9 + $0x20] sm:$0xff]  ;;  %v293_v18 = vld [vmem:[%s1168_s9 + $0x58] sm:$0xff]  ;;  %v310_v31 = vmul.f32 %v294_v13, %v294_v13  ;;  %v1239_v49 = vand.u32 127, %v472_v46  ;;  %s268_s24 = scalar_lea.vmem [#allocation5], %s775_s22  ;;  %s623_s8 = scalar_lea.sflag [#allocation4], %s1164_s6 }
  0x30   : > { %802 = vmatprep.subr.mxu0 %v1051_v0  ;;  %318 = vadd.xlane.f32.xlu1 %v300_v6  ;;  %v303_v16 = vmul.f32 %v287_v14, %v287_v14  ;;  %v302_v17 = vmul.f32 %v286_v15, %v286_v15  ;;  %v289_v19 = vld [vmem:[%s1168_s9 + $0x38] sm:$0xff]  ;;  %v288_v20 = vld [vmem:[%s1168_s9 + $0x30] sm:$0xff]  ;;  %v291_v24 = vld [vmem:[%s1168_s9 + $0x48] sm:$0xff]  ;;  %v309_v28 = vmul.f32 %v293_v18, %v293_v18  ;;  %v1241_v52 = vshrl.u32 %v472_v46, 7  ;;  %s638_s26 = sshll.u32 %s268_s24, 4  ;;  %s1054_s10 = smov [#allocation5]   ;;  %s639_s26 = int_to_ptr.vmem [resolvable:$true] %s638_s26 }
  0x31   : > { %314 = vadd.xlane.f32.xlu0 %v298_v9  ;;  %v305_v21 = vmul.f32 %v289_v19, %v289_v19  ;;  %v304_v22 = vmul.f32 %v288_v20, %v288_v20  ;;  %v292_v23 = vld [vmem:[%s1168_s9 + $0x50] sm:$0xff]  ;;  %v290_v25 = vld [vmem:[%s1168_s9 + $0x40] sm:$0xff]  ;;  %v307_v26 = vmul.f32 %v291_v24, %v291_v24  ;;  %v478_v53 = vadd.s32 4294967288, %v1239_v49  ;;  %s966_s9 = scalar_lea.vmem %s639_s26, 128  ;;  %s970_s11 = sshll.u32 %s1054_s10, 4  ;;  %s971_s11 = int_to_ptr.vmem [resolvable:$false] %s970_s11 }
  0x32   : > { %v306_v27 = vmul.f32 %v290_v25, %v290_v25  ;;  %v308_v29 = vmul.f32 %v292_v23, %v292_v23  ;;  %v611_v34 = vld [vmem:[%s1318_s0] sm:$0xff]  ;;  %v485_v56 = vadd.s32 4294967280, %v1239_v49  ;;  %v476_v60 = vsub.s32 %v1239_v49, %v1241_v52  ;;  %p967_p8 = scmp.ne.s32.totalorder %s639_s26, %s966_s9  ;;  %s972_s12 = scalar_lea.vmem %s971_s11, 256 }
  0x33   : > { %803 = vmatpush3.xpose.msra.mxu0 %v296_v3  ;;  %v614_v36 = vsub.s32 %v611_v34, %v613_v35  ;;  %v449_v37 = vld [vmem:[%s1319_s1] sm:$0xff]  ;;  %v481_v61 = vsub.s32 %v478_v53, %v1241_v52  ;;  %v492_v63 = vadd.s32 4294967272, %v1239_v49  ;;  %v499_v6 = vadd.s32 4294967264, %v1239_v49  ;;  %p973_p1 = scmp.lt.s32.totalorder %s639_s26, %s971_s11  ;;  %p974_p3 = scmp.lt.s32.totalorder %s972_s12, %s966_s9 }
  0x34   : > { %804 = vmatprep.subr.mxu0 %v1051_v0  ;;  %320 = vadd.xlane.f32.xlu1 %v301_v11  ;;  %v378_v38 = vld [vmem:[%s1320_s2] sm:$0xff]  ;;  %v488_v2 = vsub.s32 %v485_v56, %v1241_v52  ;;  %vm497_vm3 = vcmask 261312   ;;  %vm504_vm4 = vcmask 326912   ;;  %vm511_vm5 = vcmask 392512   ;;  %p968_p12 = pnand %p967_p8, %p1131_p9 }
  0x35   : > { %316 = vadd.xlane.f32.xlu0 %v299_v12  ;;  %v495_v9 = vsub.s32 %v492_v63, %v1241_v52  ;;  %v527_v34 = vadd.s32 4294967232, %v1239_v49  ;;  %vm518_vm6 = vcmask 458112   ;;  %vm525_vm7 = vcmask 523712   ;;  %p975_p5 = por %p974_p3, %p973_p1 }
  0x36   : > { %vm532_vm8 = vcmask 589312   ;;  %vm539_vm9 = vcmask 654912   ;;  %v555_v63 = vadd.s32 4294967200, %v1239_v49  ;;  %vm546_vm10 = vcmask 720512   ;;  %p969_p0 = pneg %p968_p12 }
  0x37   : > { %805 = vmatpush3.xpose.msra.mxu0 %v295_v7  ;;  %vm553_vm11 = vcmask 786112   ;;  %vm560_vm12 = vcmask 851712   ;;  %vm567_vm13 = vcmask 917312   ;;  %vm574_vm14 = vcmask 982912  }
  0x38   : > { %806 = vmatprep.subr.mxu0 %v1051_v0  ;;  %324 = vadd.xlane.f32.xlu1 %v303_v16  ;;  %v502_v16 = vsub.s32 %v499_v6, %v1241_v52  ;;  %vm581_vm15 = vcmask 1048512   ;;  %p976_p6 = pnand %p975_p5, %p969_p0 }
  0x39   : > { %322 = vadd.xlane.f32.xlu0 %v302_v17 }
  0x3b   : > { %807 = vmatpush3.xpose.msra.mxu0 %v294_v13  ;;  %v506_v13 = vadd.s32 4294967256, %v1239_v49 }
  0x3c   : > { %808 = vmatprep.subr.mxu0 %v1051_v0  ;;  %328 = vadd.xlane.f32.xlu1 %v305_v21 }
  0x3d   : > { %326 = vadd.xlane.f32.xlu0 %v304_v22 }
  0x3f   : > { %809 = vmatpush3.xpose.msra.mxu0 %v293_v18 }
  0x40   : > { %810 = vmatprep.subr.mxu0 %v1051_v0  ;;  %332 = vadd.xlane.f32.xlu1 %v307_v26 }
  0x41   : > { %330 = vadd.xlane.f32.xlu0 %v306_v27  ;;  %v520_v27 = vadd.s32 4294967240, %v1239_v49 }
  0x43   : > { %811 = vmatpush3.xpose.msra.mxu0 %v292_v23  ;;  %v509_v23 = vsub.s32 %v506_v13, %v1241_v52 }
  0x44   : > { %812 = vmatprep.subr.mxu0 %v1051_v0  ;;  %336 = vadd.xlane.f32.xlu1 %v309_v28 }
  0x45   : > { %334 = vadd.xlane.f32.xlu0 %v308_v29 }
  0x47   : > { %813 = vmatpush3.xpose.msra.mxu0 %v291_v24 }
  0x48   : > { %814 = vmatprep.subr.mxu0 %v1051_v0  ;;  %340 = vadd.xlane.f32.xlu1 %v311_v30 }
  0x49   : > { %338 = vadd.xlane.f32.xlu0 %v310_v31 }
  0x4b   : > { %815 = vmatpush3.xpose.msra.mxu0 %v290_v25 }
  0x4c   : > { %816 = vmatprep.subr.mxu0 %v1051_v0  ;;  %344 = vadd.xlane.f32.xlu1 %v313_v32 }
  0x4d   : > { %342 = vadd.xlane.f32.xlu0 %v312_v33 }
  0x4f   : > { %817 = vmatpush3.xpose.msra.mxu0 %v289_v19 }
  0x50   : > { %818 = vmatprep.subr.mxu0 %v1051_v0 }
  0x53   : > { %819 = vmatpush3.xpose.msra.mxu0 %v288_v20  ;;  %v513_v20 = vadd.s32 4294967248, %v1239_v49 }
  0x54   : > { %820 = vmatprep.subr.mxu0 %v1051_v0 }
  0x55   : > { %v516_v30 = vsub.s32 %v513_v20, %v1241_v52 }
  0x57   : > { %821 = vmatpush3.xpose.msra.mxu0 %v287_v14 }
  0x58   : > { %822 = vmatprep.subr.mxu0 %v1051_v0 }
  0x5b   : > { %823 = vmatpush3.xpose.msra.mxu0 %v286_v15 }
  0x5c   : > { %824 = vmatprep.subr.mxu0 %v1051_v0 }
  0x5d   : > { %616 = vperm.xlu1 %903, %v614_v36  }
  0x5f   : > { %825 = vmatpush3.xpose.msra.mxu0 %v1190_v8 }
  0x60   : > { %826 = vmatprep.subr.mxu0 %v1051_v0 }
  0x63   : > { %827 = vmatpush3.xpose.msra.mxu0 %v1180_v4  ;;  %452 = vperm.xlu0 %902, %v449_v37   ;;  %v523_v37 = vsub.s32 %v520_v27, %v1241_v52 }
  0x64   : > { %828 = vmatprep.subr.mxu0 %v1051_v0 }
  0x67   : > { %829 = vmatpush3.xpose.msra.mxu0 %v1195_v10 }
  0x68   : > { %830 = vmatprep.subr.mxu0 %v1051_v0 }
  0x6b   : > { %831 = vmatpush3.xpose.msra.mxu0 %v1183_v5 }
  0x6e   : > { %833 = vmatmul.mubr.f32.vlgmr.msra.gmra.mxu0 %v378_v38 }
  0xb9   : > { %v319_v40 = vpop.xlane.xlu1 %318 }
  0xba   : > { %v315_v39 = vpop.xlane.xlu0 %314  ;;  %v348_v44 = vmax.f32 %v319_v40, 1e-24 }
  0xbb   : > { %v346_v41 = vmax.f32 %v315_v39, 1e-24 }
  0xbd   : > { %904 = vrsqrt.f32 %v346_v41  ;;  %v321_v45 = vpop.xlane.xlu1 %320  ;;  %v534_v41 = vadd.s32 4294967224, %v1239_v49 }
  0xbe   : > { %v317_v42 = vpop.xlane.xlu0 %316  ;;  %v349_v47 = vmax.f32 %v321_v45, 1e-24 }
  0xbf   : > { %v347_v43 = vmax.f32 %v317_v42, 1e-24  ;;  %v537_v53 = vsub.s32 %v534_v41, %v1241_v52 }
  0xc1   : > { %906 = vrsqrt.f32 %v347_v43  ;;  %v325_v51 = vpop.xlane.xlu1 %324 }
  0xc2   : > { %v323_v48 = vpop.xlane.xlu0 %322  ;;  %908 = vrsqrt.f32 %v348_v44  ;;  %v351_v54 = vmax.f32 %v325_v51, 1e-24  ;;  %v530_v44 = vsub.s32 %v527_v34, %v1241_v52 }
  0xc3   : > { %v350_v50 = vmax.f32 %v323_v48, 1e-24  ;;  %910 = vrsqrt.f32 %v349_v47  ;;  %v541_v48 = vadd.s32 4294967216, %v1239_v49 }
  0xc5   : > { %912 = vrsqrt.f32 %v350_v50  ;;  %v329_v58 = vpop.xlane.xlu1 %328 }
  0xc6   : > { %v327_v55 = vpop.xlane.xlu0 %326  ;;  %914 = vrsqrt.f32 %v351_v54  ;;  %v353_v0 = vmax.f32 %v329_v58, 1e-24 }
  0xc7   : > { %v352_v57 = vmax.f32 %v327_v55, 1e-24 }
  0xc9   : > { %916 = vrsqrt.f32 %v352_v57  ;;  %v333_v8 = vpop.xlane.xlu1 %332  ;;  %v548_v57 = vadd.s32 4294967208, %v1239_v49 }
  0xca   : > { %v905_v59 = vpop.eup %904  ;;  %v331_v1 = vpop.xlane.xlu0 %330  ;;  %918 = vrsqrt.f32 %v353_v0  ;;  %v355_v14 = vmax.f32 %v333_v8, 1e-24 }
  0xcb   : > { %v477_v4 = vrot.slane %v905_v59, %v476_v60  ;;  %v354_v7 = vmax.f32 %v331_v1, 1e-24  ;;  %v544_v59 = vsub.s32 %v541_v48, %v1241_v52  ;;  %v551_v0 = vsub.s32 %v548_v57, %v1241_v52 }
  0xcd   : > { %920 = vrsqrt.f32 %v354_v7  ;;  %v337_v22 = vpop.xlane.xlu1 %336 }
  0xce   : > { %v907_v62 = vpop.eup %906  ;;  %v335_v15 = vpop.xlane.xlu0 %334  ;;  %922 = vrsqrt.f32 %v355_v14  ;;  %v357_v28 = vmax.f32 %v337_v22, 1e-24  ;;  %v576_v14 = vadd.s32 4294967176, %v1239_v49 }
  0xcf   : > { %v909_v3 = vpop.eup %908  ;;  %v482_v5 = vrot.slane %v907_v62, %v481_v61  ;;  %v356_v21 = vmax.f32 %v335_v15, 1e-24 }
  0xd0   : > { %v911_v10 = vpop.eup %910  ;;  %v489_v11 = vrot.slane %v909_v3, %v488_v2 }
  0xd1   : > { %v484_v12 = vsel %vm483_vm1, %v482_v5, %v477_v4  ;;  %v496_v18 = vrot.slane %v911_v10, %v495_v9  ;;  %924 = vrsqrt.f32 %v356_v21  ;;  %v341_v36 = vpop.xlane.xlu1 %340  ;;  %v562_v4 = vadd.s32 4294967192, %v1239_v49 }
  0xd2   : > { %v913_v17 = vpop.eup %912  ;;  %v491_v19 = vsel %vm490_vm2, %v489_v11, %v484_v12  ;;  %v339_v29 = vpop.xlane.xlu0 %338  ;;  %926 = vrsqrt.f32 %v357_v28  ;;  %v359_v42 = vmax.f32 %v341_v36, 1e-24  ;;  %v558_v5 = vsub.s32 %v555_v63, %v1241_v52 }
  0xd3   : > { %v915_v24 = vpop.eup %914  ;;  %v503_v25 = vrot.slane %v913_v17, %v502_v16  ;;  %v498_v26 = vsel %vm497_vm3, %v496_v18, %v491_v19  ;;  %v358_v35 = vmax.f32 %v339_v29, 1e-24  ;;  %v569_v9 = vadd.s32 4294967184, %v1239_v49 }
  0xd4   : > { %v510_v32 = vrot.slane %v915_v24, %v509_v23  ;;  %v565_v10 = vsub.s32 %v562_v4, %v1241_v52  ;;  %v579_v19 = vsub.s32 %v576_v14, %v1241_v52 }
  0xd5   : > { %v505_v33 = vsel %vm504_vm4, %v503_v25, %v498_v26  ;;  %928 = vrsqrt.f32 %v358_v35  ;;  %v345_v51 = vpop.xlane.xlu1 %344  ;;  %v572_v15 = vsub.s32 %v569_v9, %v1241_v52 }
  0xd6   : > { %v917_v31 = vpop.eup %916  ;;  %v512_v40 = vsel %vm511_vm5, %v510_v32, %v505_v33  ;;  %v343_v43 = vpop.xlane.xlu0 %342  ;;  %930 = vrsqrt.f32 %v359_v42  ;;  %v361_v58 = vmax.f32 %v345_v51, 1e-24 }
  0xd7   : > { %v919_v38 = vpop.eup %918  ;;  %v517_v39 = vrot.slane %v917_v31, %v516_v30  ;;  %v360_v50 = vmax.f32 %v343_v43, 1e-24 }
  0xd8   : > { %v524_v46 = vrot.slane %v919_v38, %v523_v37 }
  0xd9   : > { %v519_v47 = vsel %vm518_vm6, %v517_v39, %v512_v40  ;;  %932 = vrsqrt.f32 %v360_v50  ;;  %v617_v36 = vpop.permute.xlu1 %616 }
  0xda   : > { %v921_v45 = vpop.eup %920  ;;  %v526_v56 = vsel %vm525_vm7, %v524_v46, %v519_v47  ;;  %934 = vrsqrt.f32 %v361_v58  ;;  %vm618_vm2 = vcmp.eq.s32.totalorder %v1239_v49, %v617_v36 }
  0xdb   : > { %v923_v54 = vpop.eup %922  ;;  %v531_v55 = vrot.slane %v921_v45, %v530_v44 }
  0xdc   : > { %v538_v61 = vrot.slane %v923_v54, %v537_v53 }
  0xdd   : > { %v533_v62 = vsel %vm532_vm8, %v531_v55, %v526_v56 }
  0xde   : > { %v925_v60 = vpop.eup %924  ;;  %v540_v3 = vsel %vm539_vm9, %v538_v61, %v533_v62  ;;  %v453_v24 = vpop.permute.xlu0 %452 }
  0xdf   : > { %v927_v1 = vpop.eup %926  ;;  %v545_v2 = vrot.slane %v925_v60, %v544_v59 }
  0xe0   : > { %v552_v7 = vrot.slane %v927_v1, %v551_v0 }
  0xe1   : > { %v547_v8 = vsel %vm546_vm10, %v545_v2, %v540_v3 }
  0xe2   : > { %v929_v6 = vpop.eup %928  ;;  %v554_v13 = vsel %vm553_vm11, %v552_v7, %v547_v8 }
  0xe3   : > { %v931_v11 = vpop.eup %930  ;;  %v559_v12 = vrot.slane %v929_v6, %v558_v5 }
  0xe4   : > { %v566_v17 = vrot.slane %v931_v11, %v565_v10 }
  0xe5   : > { %v561_v18 = vsel %vm560_vm12, %v559_v12, %v554_v13 }
  0xe6   : > { %v933_v16 = vpop.eup %932  ;;  %v568_v22 = vsel %vm567_vm13, %v566_v17, %v561_v18 }
  0xe7   : > { %v935_v20 = vpop.eup %934  ;;  %v573_v21 = vrot.slane %v933_v16, %v572_v15 }
  0xe8   : > { %v580_v23 = vrot.slane %v935_v20, %v579_v19 }
  0xe9   : > { %v575_v25 = vsel %vm574_vm14, %v573_v21, %v568_v22 }
  0xea   : > { %v582_v28 = vsel %vm581_vm15, %v580_v23, %v575_v25 }
 0x12e   : > { %v445_v26 = vpop.f32.mrf.mxu0 }
 0x12f   : > { %v455_v27 = vmul.f32 %v453_v24, %v445_v26 }
 0x130   : > { %v834_v29 = vpop.f32.mrf.mxu0 }
 0x131   : > { %v596_v30 = vmul.f32 %v582_v28, %v455_v27 }
 0x133   : > { %v776_v31 = vclamps-f32 %v596_v30, 0.9999999 }
 0x135   : > { %v599_v32 = vmul.f32 %v776_v31, %v776_v31  ;;  %v608_v39 = vmul.f32 0.87758255, %v776_v31 }
 0x137   : > { %v600_v33 = vsub.f32 1.0, %v599_v32 }
 0x139   : > { %936 = vrsqrt.f32 %v600_v33  ;;  %vm603_vm0 = vcmp.eq.f32.partialorder %v600_v33, inf  ;;  %v606_v35 = vand.u32 2147483648, %v600_v33  ;;  %vm605_vm1 = vcmp.eq.f32.partialorder %v600_v33, 0.0 }
 0x146   : > { %v937_v34 = vpop.eup %936 }
 0x147   : > { %v602_v52 = vmul.f32 %v937_v34, %v600_v33 }
 0x149   : > { %v604_v37 = vsel %vm603_vm0, %v600_v33, %v602_v52 }
 0x14a   : > { %v607_v38 = vsel %vm605_vm1, %v606_v35, %v604_v37 }
 0x14b   : > { %v609_v40 = vmul.f32 0.47942555, %v607_v38 }
 0x14d   : > { %v610_v41 = vsub.f32 %v608_v39, %v609_v40 }
 0x14f   : > { %v619_v42 = vsel %vm618_vm2, %v610_v41, %v596_v30 }
 0x150   : > { %v620_v43 = vmul.f32 30.0, %v619_v42 }
 0x152   : > { %621 = vst [vmem:[%s268_s24] sm:$0xff] %v620_v43 }
 0x153   : > { %979 = shalt.err (!%p976_p6)
}
 0x154   : > { %s980_s18 = scalar_lea.hbm %s636_s7, 128  ;;  %s984_s13 = scalar_lea.hbm %s1322_s4, 256 }
 0x155   : > { %p981_p7 = scmp.ne.s32.totalorder %s636_s7, %s980_s18  ;;  %p985_p13 = scmp.lt.s32.totalorder %s636_s7, %s1322_s4 }
 0x156   : > { %p986_p2 = scmp.lt.s32.totalorder %s984_s13, %s980_s18 }
 0x157   : > { %p982_p10 = pnand %p981_p7, %p1131_p9 }
 0x158   : > { %p987_p8 = por %p986_p2, %p985_p13 }
 0x159   : > { %p983_p4 = pneg %p982_p10 }
 0x15b   : > { %p988_p12 = pnand %p987_p8, %p983_p4 }
 0x15d   : > { %991 = shalt.err (!%p988_p12)
}
 0x15e   : > { %837 = dma.vmem_to_hbm [thread:$0]  (%p1131_p9), %s639_s26, 128, %s636_s7, %s623_s8  }
 0x15f PF: > { %s650_s22 = sand.u32 1, %s1026_s15   ;;  %p1328_p0 = scmp.ge.s32.totalorder %s1046_s20, 2 }
 0x160   : > { %s651_s24 = scalar_lea.sflag [#allocation4], %s650_s22 }
 0x161   : > { %p844_p1 = pnand %p1328_p0, %p1138_p11 }
 0x163   : > { %p845_p3 = pneg %p844_p1 }
 0x165   : > { %1021 = dma.done.wait (%p845_p3), %s651_s24, 128  }
 0x166   : > { %1023 = vsyncadd (%p845_p3), %s651_s24, 4294967168  ;;  %s20_s20 = sadd.s32 1, %s1046_s20   ;;  %s1329_s15 = smov %s1030_s16 }
 0x167   : > { %p17_p5 = scmp.ge.s32.totalorder %s20_s20, 4   ;;  %s1330_s16 = smov %s1034_s17 }
 0x168   : > { %s1331_s17 = smov %s1136_s29  ;;  %s1332_s18 = smov %s1042_s19 }
 0x169   : > { %s1333_s19 = smov %s1335_s23  ;;  %19 = sbr.rel (!%p17_p5) target bundleno = 6 (0x6), region = 90 }
 0x16e   :  { %656 = vsyncpa [#allocation3], 1 }
 0x16f   :  { %658 = vsyncpa [#allocation3 + $0x1], 1 }
 0x170   :  { %659 = vsyncpa [#allocation4], 1 }
 0x171   :  { %661 = vsyncpa [#allocation4 + $0x1], 1 }

</bundles_post_ra>
